<compile_context>
chip_gen: v5e
topology: v5e:2x2
jax: 0.10.0
libtpu: 0.0.40
codegen_flags: <defaults>
</compile_context>

<pallas_src>
import numpy as np

import jax
import jax.numpy as jnp
from jax.experimental import pallas as pl
from jax.experimental.pallas import tpu as pltpu

EPS = 1e-5
KERNEL_SIZES = (5, 3, 2)   # stride == kernel_size for every conv in the module


def _bn_relu(acc, gamma, beta):
    """Training-mode BatchNorm1d (biased variance) + ReLU, single pass.

    acc:   (n, C) f32 pre-BN activations (rows may be in any order; BN stats
           are order-invariant).
    gamma, beta: (1, C) f32 affine params (zero on padded channels).
    Folds normalization into y = acc * scale + shift.
    """
    inv_n = 1.0 / acc.shape[0]
    s = jnp.sum(acc, axis=0, keepdims=True)
    ss = jnp.sum(acc * acc, axis=0, keepdims=True)
    mean = s * inv_n
    var = jnp.maximum(ss * inv_n - mean * mean, 0.0)   # biased var, clamped >= 0
    scale = gamma * jax.lax.rsqrt(var + EPS)           # rsqrt -> EUP slot (free)
    shift = beta - mean * scale
    return jnp.maximum(acc * scale + shift, 0.0)       # ReLU


def encoder_cnn_kernel(x_ref, w1_ref, w2_ref, w3_ref, bn_ref, out_ref,
                       h1_ref, h2_ref):
    # h1_ref: (k2, B*L2, Hp) bf16   h2_ref: (k3, B*L3, Hp) bf16
    k2, n2, _ = h1_ref.shape
    k3, n3, _ = h2_ref.shape

    bn = bn_ref[...]                     # one (8, Hp) load for all BN params
    g1, be1 = bn[0:1, :], bn[1:2, :]
    g2, be2 = bn[2:3, :], bn[3:4, :]
    g3, be3 = bn[4:5, :], bn[5:6, :]

    # ---- Layer 1: fused Linear + Conv1 (stride == kernel) as ONE matmul ----
    # x_ref rows are already tap-merged AND permuted by the wrapper so that
    # layer-2 tap j is the contiguous block of rows [j*n2, (j+1)*n2).
    # Bias is intentionally absent (cancelled exactly by training-mode BN).
    acc1 = jnp.dot(x_ref[...], w1_ref[...], preferred_element_type=jnp.float32)
    h1 = _bn_relu(acc1, g1, be1)
    for j in range(k2):                       # store tap blocks on leading axis
        h1_ref[j] = h1[j * n2:(j + 1) * n2, :].astype(h1_ref.dtype)

    # ---- Layer 2: Conv1d(k2 == stride) + BN + ReLU ----
    # Taps are leading-dim slabs of h1_ref -> plain aligned loads, no strided
    # sublane reads.  Dots issued back-to-back into one f32 acc (v7x MRB).
    acc2 = jnp.zeros((n2, h1_ref.shape[2]), jnp.float32)
    for j in range(k2):
        acc2 = acc2 + jnp.dot(h1_ref[j], w2_ref[j],
                              preferred_element_type=jnp.float32)
    h2 = _bn_relu(acc2, g2, be2)
    for j in range(k3):
        h2_ref[j] = h2[j * n3:(j + 1) * n3, :].astype(h2_ref.dtype)

    # ---- Layer 3: Conv1d(k3 == stride) + BN + ReLU ----
    acc3 = jnp.zeros((n3, h2_ref.shape[2]), jnp.float32)
    for j in range(k3):
        acc3 = acc3 + jnp.dot(h2_ref[j], w3_ref[j],
                              preferred_element_type=jnp.float32)
    out_ref[...] = _bn_relu(acc3, g3, be3)    # rows already in (b, t3) order


def encoder_cnn_forward(input_seqs, params):
    """input_seqs: (T, B, input_size) f32. Returns (outputs, hidden) like the module."""
    T, B, IN = input_seqs.shape
    H = params["w_in"].shape[0]
    k1, k2, k3 = KERNEL_SIZES
    assert T % (k1 * k2 * k3) == 0, "T must be divisible by 30 for exact conv coverage"
    L1, L2, L3 = T // k1, T // (k1 * k2), T // (k1 * k2 * k3)

    Hp = ((H + 127) // 128) * 128          # lane-dense channel axis
    K1 = k1 * IN
    Kp = ((K1 + 127) // 128) * 128         # lane-aligned contraction for layer 1

    # ---- Layout glue (pure XLA, outside the kernel) ----
    # Tap-merge conv1 windows on the lane axis: row (b*L1 + t1) of x_win holds
    # input[b, 5*t1 : 5*t1+5, :] flattened.
    x_bt = jnp.transpose(input_seqs, (1, 0, 2))            # (B, T, IN)
    x_win = x_bt.reshape(B * L1, K1)                       # (B*L1, k1*IN)

    # Row permutation: order layer-1 output rows as (j2, j3, b, t3) so that
    #   conv2 tap j2 = contiguous block j2 of layer-1 rows, and
    #   conv3 tap j3 = contiguous block j3 of layer-2 rows,
    # and the final output comes out directly in (b, t3) order.
    r2 = np.arange(B * L2)
    j3 = r2 // (B * L3)
    rem2 = r2 % (B * L3)
    b_of_r2 = rem2 // L3
    t3_of_r2 = rem2 % L3
    t2_of_r2 = k3 * t3_of_r2 + j3

    r1 = np.arange(B * L1)
    j2 = r1 // (B * L2)
    r2_of_r1 = r1 % (B * L2)
    b_of_r1 = b_of_r2[r2_of_r1]
    t1_of_r1 = k2 * t2_of_r2[r2_of_r1] + j2
    perm1 = jnp.asarray(b_of_r1 * L1 + t1_of_r1, dtype=jnp.int32)

    x_perm = jnp.take(x_win, perm1, axis=0)                # free XLA gather
    x_padded = jnp.pad(x_perm, ((0, 0), (0, Kp - K1))).astype(jnp.bfloat16)

    # ---- Fuse Linear into Conv1 (exact composition; bias dropped: BN cancels it)
    w_in_T = jnp.transpose(params["w_in"])                      # (IN, H_in)
    w1_tap = jnp.transpose(params["w_conv1"], (2, 1, 0))        # (k1, H_in, H_out)
    w1_fused = jnp.einsum("ih,khj->kij", w_in_T, w1_tap,
                          precision=jax.lax.Precision.HIGHEST)  # (k1, IN, H)
    w1_merged = w1_fused.reshape(K1, H)
    w1_p = jnp.pad(w1_merged, ((0, Kp - K1), (0, Hp - H))).astype(jnp.bfloat16)

    # Conv2/Conv3 weights: PyTorch (C_out, C_in, k) -> tap-major (k, C_in, C_out),
    # zero-padded to lane-dense channel axes, bf16.
    w2 = jnp.transpose(params["w_conv2"], (2, 1, 0))
    w2_p = jnp.pad(w2, ((0, 0), (0, Hp - H), (0, Hp - H))).astype(jnp.bfloat16)
    w3 = jnp.transpose(params["w_conv3"], (2, 1, 0))
    w3_p = jnp.pad(w3, ((0, 0), (0, Hp - H), (0, Hp - H))).astype(jnp.bfloat16)

    # All BN affine params packed into a single (8, Hp) f32 operand.
    bn = jnp.zeros((8, Hp), jnp.float32)
    for row, name in enumerate(("gamma1", "beta1", "gamma2", "beta2",
                                "gamma3", "beta3")):
        bn = bn.at[row, :H].set(params[name])

    # Advisory cost estimate for XLA's scheduler.
    flops = 2 * (B * L1 * Kp * Hp + B * L2 * k2 * Hp * Hp + B * L3 * k3 * Hp * Hp)
    bytes_accessed = (B * L1 * Kp * 2
                      + (Kp * Hp + k2 * Hp * Hp + k3 * Hp * Hp) * 2
                      + 8 * Hp * 4
                      + B * L3 * Hp * 4)
    cost = pl.CostEstimate(flops=flops, transcendentals=3 * Hp,
                           bytes_accessed=bytes_accessed)

    out = pl.pallas_call(
        encoder_cnn_kernel,
        out_shape=jax.ShapeDtypeStruct((B * L3, Hp), jnp.float32),
        scratch_shapes=[
            pltpu.VMEM((k2, B * L2, Hp), jnp.bfloat16),   # post conv1+BN+ReLU, tap-major
            pltpu.VMEM((k3, B * L3, Hp), jnp.bfloat16),   # post conv2+BN+ReLU, tap-major
        ],
        compiler_params=pltpu.CompilerParams(vmem_limit_bytes=32 * 1024 * 1024),
        cost_estimate=cost,
    )(x_padded, w1_p, w2_p, w3_p, bn)

    # Slice off channel padding; back to PyTorch NCL: (B, hidden_size, L3).
    hidden = jnp.transpose(out[:, :H].reshape(B, L3, H), (0, 2, 1))
    outputs = jnp.array(0, dtype=jnp.int32)   # torch.tensor(0) placeholder
    return outputs, hidden


def reference_forward(input_seqs, params):
    """Pure-JAX reference mirroring PyTorch semantics (for validation)."""
    h = jnp.einsum("tbi,hi->tbh", input_seqs, params["w_in"],
                   precision=jax.lax.Precision.HIGHEST) + params["b_in"]
    h = jnp.transpose(h, (1, 2, 0))  # (B, H, T)
    for i, k in zip((1, 2, 3), KERNEL_SIZES):
        h = jax.lax.conv_general_dilated(
            h, params[f"w_conv{i}"], window_strides=(k,), padding="VALID",
            dimension_numbers=("NCH", "OIH", "NCH"),
            precision=jax.lax.Precision.HIGHEST)
        mean = jnp.mean(h, axis=(0, 2), keepdims=True)
        var = jnp.mean(jnp.square(h - mean), axis=(0, 2), keepdims=True)
        h = (h - mean) / jnp.sqrt(var + EPS)
        h = h * params[f"gamma{i}"][None, :, None] + params[f"beta{i}"][None, :, None]
        h = jnp.maximum(h, 0.0)
    return h


if __name__ == "__main__":
    # Small shapes consistent with the module: T=60 (divisible by 5*3*2),
    # batch B=2, input_size=8, hidden_size=32.
    T, B, IN, H = 60, 2, 8, 32
    key = jax.random.PRNGKey(0)
    ks = jax.random.split(key, 13)

    params = {
        "w_in":    0.2 * jax.random.normal(ks[0], (H, IN), jnp.float32),
        "b_in":    0.1 * jax.random.normal(ks[1], (H,), jnp.float32),
        "w_conv1": 0.1 * jax.random.normal(ks[2], (H, H, 5), jnp.float32),
        "gamma1":  1.0 + 0.1 * jax.random.normal(ks[3], (H,), jnp.float32),
        "beta1":   0.1 * jax.random.normal(ks[4], (H,), jnp.float32),
        "w_conv2": 0.1 * jax.random.normal(ks[5], (H, H, 3), jnp.float32),
        "gamma2":  1.0 + 0.1 * jax.random.normal(ks[6], (H,), jnp.float32),
        "beta2":   0.1 * jax.random.normal(ks[7], (H,), jnp.float32),
        "w_conv3": 0.1 * jax.random.normal(ks[8], (H, H, 2), jnp.float32),
        "gamma3":  1.0 + 0.1 * jax.random.normal(ks[9], (H,), jnp.float32),
        "beta3":   0.1 * jax.random.normal(ks[10], (H,), jnp.float32),
    }
    input_seqs = jax.random.normal(ks[11], (T, B, IN), jnp.float32)

    outputs, hidden = encoder_cnn_forward(input_seqs, params)
    hidden = jax.block_until_ready(hidden)

    assert hidden.shape == (B, H, T // 30), hidden.shape

    ref = jax.block_until_ready(reference_forward(input_seqs, params))
    # bf16 MXU operands + bf16 intermediate scratch through 3 batch-normalized
    # layers vs an f32 HIGHEST reference: values are O(1) after BN, expected
    # max abs error ~1e-2.
    max_err = float(jnp.max(jnp.abs(hidden - ref)))
    assert max_err < 1e-1, f"mismatch vs reference: max abs err = {max_err}"

    print("KERNEL_OK")
</pallas_src>

<mosaic_0001>
module attributes {stable_mosaic.version = 11 : i64} {
  func.func @encoder_cnn_kernel(%arg0: memref<24x128xbf16, #tpu.memory_space<vmem>>, %arg1: memref<128x128xbf16, #tpu.memory_space<vmem>>, %arg2: memref<3x128x128xbf16, #tpu.memory_space<vmem>>, %arg3: memref<2x128x128xbf16, #tpu.memory_space<vmem>>, %arg4: memref<8x128xf32, #tpu.memory_space<vmem>>, %arg5: memref<4x128xf32, #tpu.memory_space<vmem>>, %arg6: memref<3x8x128xbf16, #tpu.memory_space<vmem>>, %arg7: memref<2x4x128xbf16, #tpu.memory_space<vmem>>) attributes {dimension_semantics = [], scalar_prefetch = 0 : i64, scratch_operands = 2 : i64, tpu.core_type = #tpu.core_type<tc>} {
    %c0 = arith.constant 0 : index
    %c0_0 = arith.constant 0 : index
    %0 = vector.load %arg4[%c0, %c0_0] : memref<8x128xf32, #tpu.memory_space<vmem>>, vector<8x128xf32>
    %1 = vector.extract_strided_slice %0 {offsets = [0, 0], sizes = [1, 128], strides = [1, 1]} : vector<8x128xf32> to vector<1x128xf32>
    %2 = vector.extract_strided_slice %0 {offsets = [1, 0], sizes = [1, 128], strides = [1, 1]} : vector<8x128xf32> to vector<1x128xf32>
    %3 = vector.extract_strided_slice %0 {offsets = [2, 0], sizes = [1, 128], strides = [1, 1]} : vector<8x128xf32> to vector<1x128xf32>
    %4 = vector.extract_strided_slice %0 {offsets = [3, 0], sizes = [1, 128], strides = [1, 1]} : vector<8x128xf32> to vector<1x128xf32>
    %5 = vector.extract_strided_slice %0 {offsets = [4, 0], sizes = [1, 128], strides = [1, 1]} : vector<8x128xf32> to vector<1x128xf32>
    %6 = vector.extract_strided_slice %0 {offsets = [5, 0], sizes = [1, 128], strides = [1, 1]} : vector<8x128xf32> to vector<1x128xf32>
    %c0_1 = arith.constant 0 : index
    %c0_2 = arith.constant 0 : index
    %7 = vector.load %arg0[%c0_1, %c0_2] : memref<24x128xbf16, #tpu.memory_space<vmem>>, vector<24x128xbf16>
    %c0_3 = arith.constant 0 : index
    %c0_4 = arith.constant 0 : index
    %8 = vector.load %arg1[%c0_3, %c0_4] : memref<128x128xbf16, #tpu.memory_space<vmem>>, vector<128x128xbf16>
    %cst = arith.constant dense<0.000000e+00> : vector<24x128xf32>
    %9 = tpu.matmul %7, %8, %cst {dimension_numbers = #tpu.dot_dimension_numbers<[1], [0], [0], [1], [0, 0, 1, 1], [], []>} : vector<24x128xbf16>, vector<128x128xbf16>, vector<24x128xf32> -> vector<24x128xf32>
    %cst_5 = arith.constant dense<0.000000e+00> : vector<128xf32>
    %10 = vector.multi_reduction <add>, %9, %cst_5 [0] : vector<24x128xf32> to vector<128xf32>
    %11 = vector.shape_cast %10 : vector<128xf32> to vector<1x128xf32>
    %12 = arith.mulf %9, %9 : vector<24x128xf32>
    %cst_6 = arith.constant dense<0.000000e+00> : vector<128xf32>
    %13 = vector.multi_reduction <add>, %12, %cst_6 [0] : vector<24x128xf32> to vector<128xf32>
    %14 = vector.shape_cast %13 : vector<128xf32> to vector<1x128xf32>
    %cst_7 = arith.constant 0.0416666679 : f32
    %15 = vector.broadcast %cst_7 : f32 to vector<1x128xf32>
    %16 = arith.mulf %11, %15 : vector<1x128xf32>
    %cst_8 = arith.constant 0.0416666679 : f32
    %17 = vector.broadcast %cst_8 : f32 to vector<1x128xf32>
    %18 = arith.mulf %14, %17 : vector<1x128xf32>
    %19 = arith.mulf %16, %16 : vector<1x128xf32>
    %20 = arith.subf %18, %19 : vector<1x128xf32>
    %cst_9 = arith.constant 0.000000e+00 : f32
    %21 = vector.broadcast %cst_9 : f32 to vector<1x128xf32>
    %22 = arith.maximumf %20, %21 : vector<1x128xf32>
    %cst_10 = arith.constant 9.99999974E-6 : f32
    %23 = vector.broadcast %cst_10 : f32 to vector<1x128xf32>
    %24 = arith.addf %22, %23 : vector<1x128xf32>
    %25 = math.rsqrt %24 : vector<1x128xf32>
    %26 = arith.mulf %1, %25 : vector<1x128xf32>
    %27 = arith.mulf %16, %26 : vector<1x128xf32>
    %28 = arith.subf %2, %27 : vector<1x128xf32>
    %29 = vector.broadcast %26 : vector<1x128xf32> to vector<24x128xf32>
    %30 = arith.mulf %9, %29 : vector<24x128xf32>
    %31 = vector.broadcast %28 : vector<1x128xf32> to vector<24x128xf32>
    %32 = arith.addf %30, %31 : vector<24x128xf32>
    %cst_11 = arith.constant 0.000000e+00 : f32
    %33 = vector.broadcast %cst_11 : f32 to vector<24x128xf32>
    %34 = arith.maximumf %32, %33 : vector<24x128xf32>
    %35 = vector.extract_strided_slice %34 {offsets = [0, 0], sizes = [8, 128], strides = [1, 1]} : vector<24x128xf32> to vector<8x128xf32>
    %36 = arith.truncf %35 : vector<8x128xf32> to vector<8x128xbf16>
    %c0_12 = arith.constant 0 : index
    %c0_13 = arith.constant 0 : index
    %c0_14 = arith.constant 0 : index
    %37 = vector.load %arg6[%c0_12, %c0_13, %c0_14] : memref<3x8x128xbf16, #tpu.memory_space<vmem>>, vector<1x8x128xbf16>
    %38 = vector.shape_cast %37 : vector<1x8x128xbf16> to vector<8x128xbf16>
    %39 = vector.shape_cast %36 : vector<8x128xbf16> to vector<1x8x128xbf16>
    tpu.vector_store %arg6[%c0_12, %c0_13, %c0_14], %39 {strides = array<i32>} : memref<3x8x128xbf16, #tpu.memory_space<vmem>>, vector<1x8x128xbf16>,
    %40 = vector.extract_strided_slice %34 {offsets = [8, 0], sizes = [8, 128], strides = [1, 1]} : vector<24x128xf32> to vector<8x128xf32>
    %41 = arith.truncf %40 : vector<8x128xf32> to vector<8x128xbf16>
    %c1 = arith.constant 1 : index
    %c0_15 = arith.constant 0 : index
    %c0_16 = arith.constant 0 : index
    %42 = vector.load %arg6[%c1, %c0_15, %c0_16] : memref<3x8x128xbf16, #tpu.memory_space<vmem>>, vector<1x8x128xbf16>
    %43 = vector.shape_cast %42 : vector<1x8x128xbf16> to vector<8x128xbf16>
    %44 = vector.shape_cast %41 : vector<8x128xbf16> to vector<1x8x128xbf16>
    tpu.vector_store %arg6[%c1, %c0_15, %c0_16], %44 {strides = array<i32>} : memref<3x8x128xbf16, #tpu.memory_space<vmem>>, vector<1x8x128xbf16>,
    %45 = vector.extract_strided_slice %34 {offsets = [16, 0], sizes = [8, 128], strides = [1, 1]} : vector<24x128xf32> to vector<8x128xf32>
    %46 = arith.truncf %45 : vector<8x128xf32> to vector<8x128xbf16>
    %c2 = arith.constant 2 : index
    %c0_17 = arith.constant 0 : index
    %c0_18 = arith.constant 0 : index
    %47 = vector.load %arg6[%c2, %c0_17, %c0_18] : memref<3x8x128xbf16, #tpu.memory_space<vmem>>, vector<1x8x128xbf16>
    %48 = vector.shape_cast %47 : vector<1x8x128xbf16> to vector<8x128xbf16>
    %49 = vector.shape_cast %46 : vector<8x128xbf16> to vector<1x8x128xbf16>
    tpu.vector_store %arg6[%c2, %c0_17, %c0_18], %49 {strides = array<i32>} : memref<3x8x128xbf16, #tpu.memory_space<vmem>>, vector<1x8x128xbf16>,
    %cst_19 = arith.constant 0.000000e+00 : f32
    %50 = vector.broadcast %cst_19 : f32 to vector<8x128xf32>
    %c0_20 = arith.constant 0 : index
    %c0_21 = arith.constant 0 : index
    %c0_22 = arith.constant 0 : index
    %51 = vector.load %arg6[%c0_20, %c0_21, %c0_22] : memref<3x8x128xbf16, #tpu.memory_space<vmem>>, vector<1x8x128xbf16>
    %52 = vector.shape_cast %51 : vector<1x8x128xbf16> to vector<8x128xbf16>
    %c0_23 = arith.constant 0 : index
    %c0_24 = arith.constant 0 : index
    %c0_25 = arith.constant 0 : index
    %53 = vector.load %arg2[%c0_23, %c0_24, %c0_25] : memref<3x128x128xbf16, #tpu.memory_space<vmem>>, vector<1x128x128xbf16>
    %54 = vector.shape_cast %53 : vector<1x128x128xbf16> to vector<128x128xbf16>
    %cst_26 = arith.constant dense<0.000000e+00> : vector<8x128xf32>
    %55 = tpu.matmul %52, %54, %cst_26 {dimension_numbers = #tpu.dot_dimension_numbers<[1], [0], [0], [1], [0, 0, 1, 1], [], []>} : vector<8x128xbf16>, vector<128x128xbf16>, vector<8x128xf32> -> vector<8x128xf32>
    %56 = arith.addf %50, %55 : vector<8x128xf32>
    %c1_27 = arith.constant 1 : index
    %c0_28 = arith.constant 0 : index
    %c0_29 = arith.constant 0 : index
    %57 = vector.load %arg6[%c1_27, %c0_28, %c0_29] : memref<3x8x128xbf16, #tpu.memory_space<vmem>>, vector<1x8x128xbf16>
    %58 = vector.shape_cast %57 : vector<1x8x128xbf16> to vector<8x128xbf16>
    %c1_30 = arith.constant 1 : index
    %c0_31 = arith.constant 0 : index
    %c0_32 = arith.constant 0 : index
    %59 = vector.load %arg2[%c1_30, %c0_31, %c0_32] : memref<3x128x128xbf16, #tpu.memory_space<vmem>>, vector<1x128x128xbf16>
    %60 = vector.shape_cast %59 : vector<1x128x128xbf16> to vector<128x128xbf16>
    %cst_33 = arith.constant dense<0.000000e+00> : vector<8x128xf32>
    %61 = tpu.matmul %58, %60, %cst_33 {dimension_numbers = #tpu.dot_dimension_numbers<[1], [0], [0], [1], [0, 0, 1, 1], [], []>} : vector<8x128xbf16>, vector<128x128xbf16>, vector<8x128xf32> -> vector<8x128xf32>
    %62 = arith.addf %56, %61 : vector<8x128xf32>
    %c2_34 = arith.constant 2 : index
    %c0_35 = arith.constant 0 : index
    %c0_36 = arith.constant 0 : index
    %63 = vector.load %arg6[%c2_34, %c0_35, %c0_36] : memref<3x8x128xbf16, #tpu.memory_space<vmem>>, vector<1x8x128xbf16>
    %64 = vector.shape_cast %63 : vector<1x8x128xbf16> to vector<8x128xbf16>
    %c2_37 = arith.constant 2 : index
    %c0_38 = arith.constant 0 : index
    %c0_39 = arith.constant 0 : index
    %65 = vector.load %arg2[%c2_37, %c0_38, %c0_39] : memref<3x128x128xbf16, #tpu.memory_space<vmem>>, vector<1x128x128xbf16>
    %66 = vector.shape_cast %65 : vector<1x128x128xbf16> to vector<128x128xbf16>
    %cst_40 = arith.constant dense<0.000000e+00> : vector<8x128xf32>
    %67 = tpu.matmul %64, %66, %cst_40 {dimension_numbers = #tpu.dot_dimension_numbers<[1], [0], [0], [1], [0, 0, 1, 1], [], []>} : vector<8x128xbf16>, vector<128x128xbf16>, vector<8x128xf32> -> vector<8x128xf32>
    %68 = arith.addf %62, %67 : vector<8x128xf32>
    %cst_41 = arith.constant dense<0.000000e+00> : vector<128xf32>
    %69 = vector.multi_reduction <add>, %68, %cst_41 [0] : vector<8x128xf32> to vector<128xf32>
    %70 = vector.shape_cast %69 : vector<128xf32> to vector<1x128xf32>
    %71 = arith.mulf %68, %68 : vector<8x128xf32>
    %cst_42 = arith.constant dense<0.000000e+00> : vector<128xf32>
    %72 = vector.multi_reduction <add>, %71, %cst_42 [0] : vector<8x128xf32> to vector<128xf32>
    %73 = vector.shape_cast %72 : vector<128xf32> to vector<1x128xf32>
    %cst_43 = arith.constant 1.250000e-01 : f32
    %74 = vector.broadcast %cst_43 : f32 to vector<1x128xf32>
    %75 = arith.mulf %70, %74 : vector<1x128xf32>
    %cst_44 = arith.constant 1.250000e-01 : f32
    %76 = vector.broadcast %cst_44 : f32 to vector<1x128xf32>
    %77 = arith.mulf %73, %76 : vector<1x128xf32>
    %78 = arith.mulf %75, %75 : vector<1x128xf32>
    %79 = arith.subf %77, %78 : vector<1x128xf32>
    %cst_45 = arith.constant 0.000000e+00 : f32
    %80 = vector.broadcast %cst_45 : f32 to vector<1x128xf32>
    %81 = arith.maximumf %79, %80 : vector<1x128xf32>
    %cst_46 = arith.constant 9.99999974E-6 : f32
    %82 = vector.broadcast %cst_46 : f32 to vector<1x128xf32>
    %83 = arith.addf %81, %82 : vector<1x128xf32>
    %84 = math.rsqrt %83 : vector<1x128xf32>
    %85 = arith.mulf %3, %84 : vector<1x128xf32>
    %86 = arith.mulf %75, %85 : vector<1x128xf32>
    %87 = arith.subf %4, %86 : vector<1x128xf32>
    %88 = vector.broadcast %85 : vector<1x128xf32> to vector<8x128xf32>
    %89 = arith.mulf %68, %88 : vector<8x128xf32>
    %90 = vector.broadcast %87 : vector<1x128xf32> to vector<8x128xf32>
    %91 = arith.addf %89, %90 : vector<8x128xf32>
    %cst_47 = arith.constant 0.000000e+00 : f32
    %92 = vector.broadcast %cst_47 : f32 to vector<8x128xf32>
    %93 = arith.maximumf %91, %92 : vector<8x128xf32>
    %94 = vector.extract_strided_slice %93 {offsets = [0, 0], sizes = [4, 128], strides = [1, 1]} : vector<8x128xf32> to vector<4x128xf32>
    %95 = arith.truncf %94 : vector<4x128xf32> to vector<4x128xbf16>
    %c0_48 = arith.constant 0 : index
    %c0_49 = arith.constant 0 : index
    %c0_50 = arith.constant 0 : index
    %96 = vector.load %arg7[%c0_48, %c0_49, %c0_50] : memref<2x4x128xbf16, #tpu.memory_space<vmem>>, vector<1x4x128xbf16>
    %97 = vector.shape_cast %96 : vector<1x4x128xbf16> to vector<4x128xbf16>
    %98 = vector.shape_cast %95 : vector<4x128xbf16> to vector<1x4x128xbf16>
    tpu.vector_store %arg7[%c0_48, %c0_49, %c0_50], %98 {strides = array<i32>} : memref<2x4x128xbf16, #tpu.memory_space<vmem>>, vector<1x4x128xbf16>,
    %99 = vector.extract_strided_slice %93 {offsets = [4, 0], sizes = [4, 128], strides = [1, 1]} : vector<8x128xf32> to vector<4x128xf32>
    %100 = arith.truncf %99 : vector<4x128xf32> to vector<4x128xbf16>
    %c1_51 = arith.constant 1 : index
    %c0_52 = arith.constant 0 : index
    %c0_53 = arith.constant 0 : index
    %101 = vector.load %arg7[%c1_51, %c0_52, %c0_53] : memref<2x4x128xbf16, #tpu.memory_space<vmem>>, vector<1x4x128xbf16>
    %102 = vector.shape_cast %101 : vector<1x4x128xbf16> to vector<4x128xbf16>
    %103 = vector.shape_cast %100 : vector<4x128xbf16> to vector<1x4x128xbf16>
    tpu.vector_store %arg7[%c1_51, %c0_52, %c0_53], %103 {strides = array<i32>} : memref<2x4x128xbf16, #tpu.memory_space<vmem>>, vector<1x4x128xbf16>,
    %cst_54 = arith.constant 0.000000e+00 : f32
    %104 = vector.broadcast %cst_54 : f32 to vector<4x128xf32>
    %c0_55 = arith.constant 0 : index
    %c0_56 = arith.constant 0 : index
    %c0_57 = arith.constant 0 : index
    %105 = vector.load %arg7[%c0_55, %c0_56, %c0_57] : memref<2x4x128xbf16, #tpu.memory_space<vmem>>, vector<1x4x128xbf16>
    %106 = vector.shape_cast %105 : vector<1x4x128xbf16> to vector<4x128xbf16>
    %c0_58 = arith.constant 0 : index
    %c0_59 = arith.constant 0 : index
    %c0_60 = arith.constant 0 : index
    %107 = vector.load %arg3[%c0_58, %c0_59, %c0_60] : memref<2x128x128xbf16, #tpu.memory_space<vmem>>, vector<1x128x128xbf16>
    %108 = vector.shape_cast %107 : vector<1x128x128xbf16> to vector<128x128xbf16>
    %cst_61 = arith.constant dense<0.000000e+00> : vector<4x128xf32>
    %109 = tpu.matmul %106, %108, %cst_61 {dimension_numbers = #tpu.dot_dimension_numbers<[1], [0], [0], [1], [0, 0, 1, 1], [], []>} : vector<4x128xbf16>, vector<128x128xbf16>, vector<4x128xf32> -> vector<4x128xf32>
    %110 = arith.addf %104, %109 : vector<4x128xf32>
    %c1_62 = arith.constant 1 : index
    %c0_63 = arith.constant 0 : index
    %c0_64 = arith.constant 0 : index
    %111 = vector.load %arg7[%c1_62, %c0_63, %c0_64] : memref<2x4x128xbf16, #tpu.memory_space<vmem>>, vector<1x4x128xbf16>
    %112 = vector.shape_cast %111 : vector<1x4x128xbf16> to vector<4x128xbf16>
    %c1_65 = arith.constant 1 : index
    %c0_66 = arith.constant 0 : index
    %c0_67 = arith.constant 0 : index
    %113 = vector.load %arg3[%c1_65, %c0_66, %c0_67] : memref<2x128x128xbf16, #tpu.memory_space<vmem>>, vector<1x128x128xbf16>
    %114 = vector.shape_cast %113 : vector<1x128x128xbf16> to vector<128x128xbf16>
    %cst_68 = arith.constant dense<0.000000e+00> : vector<4x128xf32>
    %115 = tpu.matmul %112, %114, %cst_68 {dimension_numbers = #tpu.dot_dimension_numbers<[1], [0], [0], [1], [0, 0, 1, 1], [], []>} : vector<4x128xbf16>, vector<128x128xbf16>, vector<4x128xf32> -> vector<4x128xf32>
    %116 = arith.addf %110, %115 : vector<4x128xf32>
    %cst_69 = arith.constant dense<0.000000e+00> : vector<128xf32>
    %117 = vector.multi_reduction <add>, %116, %cst_69 [0] : vector<4x128xf32> to vector<128xf32>
    %118 = vector.shape_cast %117 : vector<128xf32> to vector<1x128xf32>
    %119 = arith.mulf %116, %116 : vector<4x128xf32>
    %cst_70 = arith.constant dense<0.000000e+00> : vector<128xf32>
    %120 = vector.multi_reduction <add>, %119, %cst_70 [0] : vector<4x128xf32> to vector<128xf32>
    %121 = vector.shape_cast %120 : vector<128xf32> to vector<1x128xf32>
    %cst_71 = arith.constant 2.500000e-01 : f32
    %122 = vector.broadcast %cst_71 : f32 to vector<1x128xf32>
    %123 = arith.mulf %118, %122 : vector<1x128xf32>
    %cst_72 = arith.constant 2.500000e-01 : f32
    %124 = vector.broadcast %cst_72 : f32 to vector<1x128xf32>
    %125 = arith.mulf %121, %124 : vector<1x128xf32>
    %126 = arith.mulf %123, %123 : vector<1x128xf32>
    %127 = arith.subf %125, %126 : vector<1x128xf32>
    %cst_73 = arith.constant 0.000000e+00 : f32
    %128 = vector.broadcast %cst_73 : f32 to vector<1x128xf32>
    %129 = arith.maximumf %127, %128 : vector<1x128xf32>
    %cst_74 = arith.constant 9.99999974E-6 : f32
    %130 = vector.broadcast %cst_74 : f32 to vector<1x128xf32>
    %131 = arith.addf %129, %130 : vector<1x128xf32>
    %132 = math.rsqrt %131 : vector<1x128xf32>
    %133 = arith.mulf %5, %132 : vector<1x128xf32>
    %134 = arith.mulf %123, %133 : vector<1x128xf32>
    %135 = arith.subf %6, %134 : vector<1x128xf32>
    %136 = vector.broadcast %133 : vector<1x128xf32> to vector<4x128xf32>
    %137 = arith.mulf %116, %136 : vector<4x128xf32>
    %138 = vector.broadcast %135 : vector<1x128xf32> to vector<4x128xf32>
    %139 = arith.addf %137, %138 : vector<4x128xf32>
    %cst_75 = arith.constant 0.000000e+00 : f32
    %140 = vector.broadcast %cst_75 : f32 to vector<4x128xf32>
    %141 = arith.maximumf %139, %140 : vector<4x128xf32>
    %c0_76 = arith.constant 0 : index
    %c0_77 = arith.constant 0 : index
    %142 = vector.load %arg5[%c0_76, %c0_77] : memref<4x128xf32, #tpu.memory_space<vmem>>, vector<4x128xf32>
    tpu.vector_store %arg5[%c0_76, %c0_77], %141 {strides = array<i32>} : memref<4x128xf32, #tpu.memory_space<vmem>>, vector<4x128xf32>,
    return
  }
}

</mosaic_0001>

<bundles_post_ra>
// kernel: tpu_custom_call.1
= control target key start
LH: loop header
LB: loop body
LE: loop exit
PB: predicated region body
PF: predicated region fallthrough
CT: control target
= control target key end

     0   :  { %10 = vsyncpa [#allocation5], 0  ;;  %s1264_s0 = inlined_call_operand.hbm [shape: bf16[24,128], index: 0, kind: input, shape index: {}]   ;;  %s1265_s1 = inlined_call_operand.hbm [shape: bf16[128,128], index: 1, kind: input, shape index: {}]   ;;  %s1266_s2 = inlined_call_operand.hbm [shape: bf16[3,128,128], index: 2, kind: input, shape index: {}]   ;;  %s1267_s3 = inlined_call_operand.hbm [shape: bf16[2,128,128], index: 3, kind: input, shape index: {}]   ;;  %s1268_s4 = inlined_call_operand.hbm [shape: f32[8,128], index: 4, kind: input, shape index: {}]   ;;  %s1269_s5 = inlined_call_operand.hbm [shape: f32[4,128], index: 5, kind: output, shape index: {}]  }
   0x1   :  { %11 = vsyncpa [#allocation8], 0 }
   0x2   :  { %12 = vsyncpa [#allocation11], 0 }
   0x3   :  { %13 = vsyncpa [#allocation6], 0  ;;  %s31_s20 = sshll.u32 %s1265_s1, 4  ;;  %s1175_s21 = smov [#allocation7]   ;;  %s32_s20 = int_to_ptr.hbm [resolvable:$true] %s31_s20 }
   0x4   :  { %s33_s22 = sshll.u32 %s1175_s21, 4  ;;  %s57_s25 = sshll.u32 %s1267_s3, 4  ;;  %s34_s22 = int_to_ptr.vmem [resolvable:$true] %s33_s22  ;;  %s58_s25 = int_to_ptr.hbm [resolvable:$true] %s57_s25 }
   0x5   :  { %s1176_s26 = smov 64   ;;  %s1177_s27 = smov 4  }
   0x6   :  { %39 = dma.hbm_to_vmem [thread:$0]  %s32_s20, 1024, %s34_s22, [#allocation8], %s1176_s26, %s1176_s26, %s1177_s27  }
   0x7   :  { %s1178_s28 = smov [#allocation10]   ;;  %s18_s7 = sshll.u32 %s1264_s0, 4  ;;  %s19_s7 = int_to_ptr.hbm [resolvable:$true] %s18_s7 }
   0x8   :  { %s59_s29 = sshll.u32 %s1178_s28, 4  ;;  %s44_s9 = sshll.u32 %s1266_s2, 4  ;;  %s60_s29 = int_to_ptr.vmem [resolvable:$true] %s59_s29  ;;  %s45_s9 = int_to_ptr.hbm [resolvable:$true] %s44_s9 }
   0x9   :  { %65 = dma.hbm_to_vmem [thread:$0]  %s58_s25, 2048, %s60_s29, [#allocation11], %s1176_s26, %s1176_s26, %s1177_s27  }
   0xa   :  { %s1179_s10 = smov [#allocation4]   ;;  %s1180_s3 = smov [#allocation9]  }
   0xb   :  { %s20_s11 = sshll.u32 %s1179_s10, 4  ;;  %s46_s12 = sshll.u32 %s1180_s3, 4  ;;  %s21_s11 = int_to_ptr.vmem [resolvable:$true] %s20_s11  ;;  %s47_s12 = int_to_ptr.vmem [resolvable:$true] %s46_s12 }
   0xc   :  { %26 = dma.hbm_to_vmem [thread:$0]  %s19_s7, 192, %s21_s11, [#allocation5], %s1176_s26, %s1176_s26, %s1177_s27  }
   0xd   :  { %s71_s15 = sshll.u32 %s1268_s4, 4  ;;  %s1181_s0 = smov [#allocation12]   ;;  %s72_s15 = int_to_ptr.hbm [resolvable:$true] %s71_s15 }
   0xe   :  { %52 = dma.hbm_to_vmem [thread:$0]  %s45_s9, 3072, %s47_s12, [#allocation8], %s1176_s26, %s1176_s26, %s1177_s27  }
   0xf   :  { %s73_s16 = sshll.u32 %s1181_s0, 4  ;;  %s74_s16 = int_to_ptr.vmem [resolvable:$true] %s73_s16 }
  0x10   :  { %76 = dma.hbm_to_vmem [thread:$0]  %s72_s15, 128, %s74_s16, [#allocation11]  }
  0x11   :  { %1167 = dma.done.wait [#allocation5], 192  }
  0x12   :  { %1168 = vsyncadd [#allocation5], 4294967104 }
  0x13   :  { %1169 = dma.done.wait [#allocation8], 4096  }
  0x14   :  { %1170 = vsyncadd [#allocation8], 4294963200 }
  0x15   :  { %1171 = dma.done.wait [#allocation11], 2176  }
  0x16   :  { %1172 = vsyncadd [#allocation11], 4294965120  ;;  %v963_v0 = vld [vmem:[#allocation7 + $0x38] sm:$0xff]  ;;  %v962_v1 = vld [vmem:[#allocation7 + $0x30] sm:$0xff]  ;;  %vm696_vm6 = vcmask 1043456   ;;  %s1182_s2 = smov [#allocation13]  }
  0x17   :  { %175 = vmatpush.bf16.msra.mxu0 %v963_v0  ;;  %v961_v2 = vld [vmem:[#allocation7 + $0x28] sm:$0xff]  ;;  %v960_v3 = vld [vmem:[#allocation7 + $0x20] sm:$0xff]  ;;  %v959_v4 = vld [vmem:[#allocation7 + $0x18] sm:$0xff]  ;;  %s745_s4 = sshll.u32 %s1182_s2, 4  ;;  %s747_s19 = sshll.u32 %s1269_s5, 4  ;;  %s746_s4 = int_to_ptr.vmem [resolvable:$true] %s745_s4  ;;  %s748_s19 = int_to_ptr.hbm [resolvable:$true] %s747_s19 }
  0x18   :  { %v958_v5 = vld [vmem:[#allocation7 + $0x10] sm:$0xff]  ;;  %v957_v6 = vld [vmem:[#allocation7 + $0x8] sm:$0xff]  ;;  %v956_v7 = vld [vmem:[#allocation7] sm:$0xff] }
  0x19   :  { %v955_v8 = vld [vmem:[#allocation4] sm:$0xff]  ;;  %v100_v9 = vld [vmem:[#allocation4 + $0x8] sm:$0xf]  ;;  %v977_v38 = vld [vmem:[#allocation9 + $0x68] sm:$0xff] }
  0x1a   :  { %v122_v10 = vunpack.c.l.b16 %v100_v9  ;;  %v979_v23 = vld [vmem:[#allocation9 + $0x78] sm:$0xff]  ;;  %v978_v30 = vld [vmem:[#allocation9 + $0x70] sm:$0xff]  ;;  %v969_v39 = vld [vmem:[#allocation9 + $0x28] sm:$0xff] }
  0x1b   :  { %176 = vmatpush.bf16.msra.mxu0 %v962_v1  ;;  %v971_v24 = vld [vmem:[#allocation9 + $0x38] sm:$0xff]  ;;  %336 = vmatpush.bf16.msra.mxu1 %v979_v23  ;;  %v970_v31 = vld [vmem:[#allocation9 + $0x30] sm:$0xff]  ;;  %v985_v40 = vld [vmem:[#allocation9 + $0xa8] sm:$0xff] }
  0x1c   :  { %v124_v11 = vpack.c.b16 %v122_v10, %v122_v10  ;;  %v987_v25 = vld [vmem:[#allocation9 + $0xb8] sm:$0xff]  ;;  %397 = vmatpush.bf16.msra.mxu2 %v971_v24  ;;  %v986_v32 = vld [vmem:[#allocation9 + $0xb0] sm:$0xff]  ;;  %v976_v45 = vld [vmem:[#allocation9 + $0x60] sm:$0xff] }
  0x1d   :  { %476 = vmatpush.bf16.msra.mxu3 %v987_v25  ;;  %v968_v46 = vld [vmem:[#allocation9 + $0x20] sm:$0xff]  ;;  %v975_v51 = vld [vmem:[#allocation9 + $0x58] sm:$0xff]  ;;  %v974_v56 = vld [vmem:[#allocation9 + $0x50] sm:$0xff] }
  0x1e   :  { %v984_v47 = vld [vmem:[#allocation9 + $0xa0] sm:$0xff]  ;;  %v967_v52 = vld [vmem:[#allocation9 + $0x18] sm:$0xff]  ;;  %v966_v57 = vld [vmem:[#allocation9 + $0x10] sm:$0xff] }
  0x1f   :  { %177 = vmatpush.bf16.msra.mxu0 %v961_v2  ;;  %337 = vmatpush.bf16.msra.mxu1 %v978_v30  ;;  %v983_v53 = vld [vmem:[#allocation9 + $0x98] sm:$0xff]  ;;  %v982_v58 = vld [vmem:[#allocation9 + $0x90] sm:$0xff]  ;;  %v973_v59 = vld [vmem:[#allocation9 + $0x48] sm:$0xff] }
  0x20   :  { %398 = vmatpush.bf16.msra.mxu2 %v970_v31  ;;  %v965_v60 = vld [vmem:[#allocation9 + $0x8] sm:$0xff]  ;;  %v972_v62 = vld [vmem:[#allocation9 + $0x40] sm:$0xff] }
  0x21   :  { %477 = vmatpush.bf16.msra.mxu3 %v986_v32  ;;  %v981_v61 = vld [vmem:[#allocation9 + $0x88] sm:$0xff]  ;;  %v964_v63 = vld [vmem:[#allocation9] sm:$0xff] }
  0x22   :  { %v980_v0 = vld [vmem:[#allocation9 + $0x80] sm:$0xff] }
  0x23   :  { %178 = vmatpush.bf16.msra.mxu0 %v960_v3  ;;  %338 = vmatpush.bf16.msra.mxu1 %v977_v38 }
  0x24   :  { %399 = vmatpush.bf16.msra.mxu2 %v969_v39 }
  0x25   :  { %478 = vmatpush.bf16.msra.mxu3 %v985_v40 }
  0x27   :  { %179 = vmatpush.bf16.msra.mxu0 %v959_v4  ;;  %339 = vmatpush.bf16.msra.mxu1 %v976_v45 }
  0x28   :  { %400 = vmatpush.bf16.msra.mxu2 %v968_v46 }
  0x29   :  { %479 = vmatpush.bf16.msra.mxu3 %v984_v47 }
  0x2b   :  { %180 = vmatpush.bf16.msra.mxu0 %v958_v5  ;;  %340 = vmatpush.bf16.msra.mxu1 %v975_v51 }
  0x2c   :  { %401 = vmatpush.bf16.msra.mxu2 %v967_v52 }
  0x2d   :  { %480 = vmatpush.bf16.msra.mxu3 %v983_v53 }
  0x2f   :  { %181 = vmatpush.bf16.msra.mxu0 %v957_v6  ;;  %341 = vmatpush.bf16.msra.mxu1 %v974_v56  ;;  %v1243_v6 = vld [vmem:[#allocation12] sm:$0xff] }
  0x30   :  { %402 = vmatpush.bf16.msra.mxu2 %v966_v57  ;;  %v992_v56 = vld [vmem:[#allocation10 + $0x20] sm:$0xff] }
  0x31   :  { %481 = vmatpush.bf16.msra.mxu3 %v982_v58 }
  0x33   :  { %182 = vmatpush.bf16.msra.mxu0 %v956_v7  ;;  %342 = vmatpush.bf16.msra.mxu1 %v973_v59 }
  0x34   :  { %403 = vmatpush.bf16.msra.mxu2 %v965_v60  ;;  %v1001_v60 = vld [vmem:[#allocation10 + $0x68] sm:$0xff] }
  0x35   :  { %482 = vmatpush.bf16.msra.mxu3 %v981_v61  ;;  %v991_v61 = vld [vmem:[#allocation10 + $0x18] sm:$0xff] }
  0x36   :  { %183 = vmatmul.bf16.vlgmr.msra.gmra.mxu0 %v955_v8 }
  0x37   :  { %343 = vmatpush.bf16.msra.mxu1 %v972_v62 }
  0x38   :  { %404 = vmatpush.bf16.msra.mxu2 %v964_v63 }
  0x39   :  { %483 = vmatpush.bf16.msra.mxu3 %v980_v0  ;;  %v1000_v0 = vld [vmem:[#allocation10 + $0x60] sm:$0xff] }
  0x46   :  { %188 = vmatmul.bf16.gmra.mxu0 %v124_v11 }
  0xb3   :  { %v1228_v12 = vpop.f32.mrf.mxu0 }
  0xb4   :  { %v201_v15 = vmul.f32 %v1228_v12, %v1228_v12 }
  0xbb   :  { %v1230_v13 = vpop.f32.mrf.mxu0 }
  0xbc   :  { %v202_v14 = vmul.f32 %v1230_v13, %v1230_v13  ;;  %v193_v16 = vadd.f32 %v1230_v13, %v1228_v12 }
  0xbe   :  { %v204_v18 = vadd.f32 %v202_v14, %v201_v15 }
  0xc3   :  { %v1238_v17 = vpop.f32.mrf.mxu0 }
  0xc4   :  { %v194_v19 = vadd.f32 %v193_v16, %v1238_v17  ;;  %v203_v20 = vmul.f32 %v1238_v17, %v1238_v17 }
  0xc6   :  { %v195_v21 = vrot.slane %v194_v19, 4  ;;  %v205_v22 = vadd.f32 %v204_v18, %v203_v20 }
  0xc8   :  { %v196_v26 = vadd.f32 %v195_v21, %v194_v19  ;;  %v206_v27 = vrot.slane %v205_v22, 4 }
  0xca   :  { %v197_v28 = vrot.slane %v196_v26, 2  ;;  %v207_v29 = vadd.f32 %v206_v27, %v205_v22 }
  0xcb   :  { %v191_v33 = vpop.f32.mrf.mxu0 }
  0xcc   :  { %v198_v34 = vadd.f32 %v197_v28, %v196_v26  ;;  %v208_v35 = vrot.slane %v207_v29, 2 }
  0xce   :  { %v199_v36 = vrot.slane %v198_v34, 1  ;;  %v209_v37 = vadd.f32 %v208_v35, %v207_v29 }
  0xd0   :  { %v200_v41 = vadd.f32 %v199_v36, %v198_v34  ;;  %v210_v42 = vrot.slane %v209_v37, 1 }
  0xd2   :  { %v211_v43 = vadd.f32 %v210_v42, %v209_v37  ;;  %v212_v44 = vmul.f32 0.041666668, %v200_v41  ;;  %v995_v37 = vld [vmem:[#allocation10 + $0x38] sm:$0xff] }
  0xd3   :  { %683 = vmatpush.bf16.msrb.mxu1 %v995_v37 }
  0xd4   :  { %v213_v48 = vmul.f32 0.041666668, %v211_v43  ;;  %v214_v49 = vmul.f32 %v212_v44, %v212_v44 }
  0xd6   :  { %v215_v50 = vsub.f32 %v213_v48, %v214_v49  ;;  %v1003_v49 = vld [vmem:[#allocation10 + $0x78] sm:$0xff] }
  0xd7   :  { %622 = vmatpush.bf16.msrb.mxu0 %v1003_v49 }
  0xd8   :  { %v216_v54 = vmax.f32 %v215_v50, 0.0  ;;  %v993_v50 = vld [vmem:[#allocation10 + $0x28] sm:$0xff] }
  0xda   :  { %v217_v55 = vadd.f32 1e-05, %v216_v54 }
  0xdc   :  { %1017 = vrsqrt.f32 %v217_v55  ;;  %vm224_vm1 = vweird.f32 %v217_v55 }
  0xe2   :  { %v1018_v1 = vpop.eup %1017 }
  0xe3   :  { %v219_v2 = vmul.f32 %v1018_v1, %v217_v55  ;;  %vm225_vm0 = vweird.f32 %v1018_v1  ;;  %v1002_v55 = vld [vmem:[#allocation10 + $0x70] sm:$0xff] }
  0xe4   :  { %vm226_vm2 = vmor %vm224_vm1, %vm225_vm0  ;;  %623 = vmatpush.bf16.msrb.mxu0 %v1002_v55 }
  0xe5   :  { %v220_v3 = vmul.f32 %v1018_v1, %v219_v2  ;;  %v999_v2 = vld [vmem:[#allocation10 + $0x58] sm:$0xff] }
  0xe7   :  { %v221_v4 = vmul.f32 0.5, %v220_v3  ;;  %v989_v3 = vld [vmem:[#allocation10 + $0x8] sm:$0xff] }
  0xe8   :  { %624 = vmatpush.bf16.msrb.mxu0 %v1001_v60 }
  0xe9   :  { %v222_v5 = vsub.f32 1.5, %v221_v4  ;;  %v998_v4 = vld [vmem:[#allocation10 + $0x50] sm:$0xff] }
  0xeb   :  { %v223_v7 = vmul.f32 %v1018_v1, %v222_v5  ;;  %v988_v5 = vld [vmem:[#allocation10] sm:$0xff] }
  0xec   :  { %625 = vmatpush.bf16.msrb.mxu0 %v1000_v0 }
  0xed   :  { %v227_v8 = vsel %vm226_vm2, %v1018_v1, %v223_v7  ;;  %v990_v1 = vld [vmem:[#allocation10 + $0x10] sm:$0xff] }
  0xee   :  { %v228_v9 = vmul.f32 %v227_v8, %v1243_v6 }
  0xf0   :  { %v229_v10 = vmul.f32 %v228_v9, %v212_v44  ;;  %v234_v14 = vperm.slane %v228_v9, 0  ;;  %v994_v44 = vld [vmem:[#allocation10 + $0x30] sm:$0xff]  ;;  %626 = vmatpush.bf16.msrb.mxu0 %v999_v2  ;;  %v997_v9 = vld [vmem:[#allocation10 + $0x48] sm:$0xff] }
  0xf1   :  { %684 = vmatpush.bf16.msrb.mxu1 %v994_v44 }
  0xf2   :  { %v231_v11 = vrot.slane %v229_v10, 7  ;;  %v235_v16 = vmul.f32 %v234_v14, %v1228_v12  ;;  %v236_v18 = vmul.f32 %v234_v14, %v1230_v13  ;;  %v237_v19 = vmul.f32 %v234_v14, %v1238_v17  ;;  %v996_v14 = vld [vmem:[#allocation10 + $0x40] sm:$0xff] }
  0xf4   :  { %v233_v15 = vsub.f32 %v1243_v6, %v231_v11  ;;  %627 = vmatpush.bf16.msrb.mxu0 %v998_v4 }
  0xf5   :  { %685 = vmatpush.bf16.msrb.mxu1 %v993_v50 }
  0xf6   :  { %v238_v20 = vperm.slane %v233_v15, 1 }
  0xf8   :  { %v239_v21 = vadd.f32 %v238_v20, %v235_v16  ;;  %v240_v22 = vadd.f32 %v238_v20, %v236_v18  ;;  %v241_v23 = vadd.f32 %v238_v20, %v237_v19  ;;  %628 = vmatpush.bf16.msrb.mxu0 %v997_v9 }
  0xf9   :  { %686 = vmatpush.bf16.msrb.mxu1 %v992_v56 }
  0xfa   :  { %v242_v24 = vmax.f32 %v239_v21, 0.0  ;;  %v243_v25 = vmax.f32 %v240_v22, 0.0  ;;  %v244_v26 = vmax.f32 %v241_v23, 0.0 }
  0xfc   :  { %v1007_v27 = vpack.c.bf16 %v243_v25, %v242_v24  ;;  %v250_v28 = vpack.c.bf16 %v244_v26, %v244_v26  ;;  %629 = vmatpush.bf16.msrb.mxu0 %v996_v14 }
  0xfd   :  { %687 = vmatpush.bf16.msrb.mxu1 %v991_v61 }
  0xfe   :  { %1008 = vst [vmem:[#allocation2] sm:$0xff] %v1007_v27  }
  0xff   :  { %252 = vst [vmem:[#allocation2 + $0x8] sm:$0xf] %v250_v28 }
 0x101   :  { %688 = vmatpush.bf16.msrb.mxu1 %v990_v1 }
 0x105   :  { %v270_v29 = vld [vmem:[#allocation2 + $0x4] sm:$0xf]  ;;  %v253_v30 = vld [vmem:[#allocation2] sm:$0xf]  ;;  %689 = vmatpush.bf16.msrb.mxu1 %v989_v3 }
 0x106   :  { %344 = vmatmul.bf16.vlgmr.msra.gmra.mxu1 %v270_v29  ;;  %405 = vmatmul.bf16.vlgmr.msra.gmra.mxu2 %v253_v30  ;;  %v410_v12 = vld [vmem:[#allocation2 + $0x8] sm:$0xf] }
 0x107   :  { %484 = vmatmul.bf16.vlgmr.msra.gmra.mxu3 %v410_v12 }
 0x109   :  { %690 = vmatpush.bf16.msrb.mxu1 %v988_v5 }
 0x183   :  { %v345_v13 = vpop.f32.mrf.mxu1 }
 0x189   :  { %v406_v31 = vpop.f32.mrf.mxu2 }
 0x18a   :  { %v407_v17 = vadd.f32 %v406_v31, %v345_v13  ;;  %v485_v32 = vpop.f32.mrf.mxu3 }
 0x18b   :  { %v347_v33 = vpop.f32.mrf.mxu1 }
 0x18c   :  { %v1250_v34 = vadd.f32 %v485_v32, %v407_v17 }
 0x18e   :  { %v490_v35 = vrot.slane %v1250_v34, 4  ;;  %v496_v36 = vmul.f32 %v1250_v34, %v1250_v34 }
 0x190   :  { %v491_v38 = vadd.f32 %v490_v35, %v1250_v34  ;;  %v497_v39 = vrot.slane %v496_v36, 4 }
 0x191   :  { %v408_v40 = vpop.f32.mrf.mxu2 }
 0x192   :  { %v492_v41 = vrot.slane %v491_v38, 2  ;;  %v498_v42 = vadd.f32 %v497_v39, %v496_v36  ;;  %v487_v43 = vpop.f32.mrf.mxu3 }
 0x194   :  { %v493_v45 = vadd.f32 %v492_v41, %v491_v38  ;;  %v499_v46 = vrot.slane %v498_v42, 2 }
 0x196   :  { %v494_v47 = vrot.slane %v493_v45, 1  ;;  %v500_v48 = vadd.f32 %v499_v46, %v498_v42 }
 0x198   :  { %v495_v51 = vadd.f32 %v494_v47, %v493_v45  ;;  %v501_v52 = vrot.slane %v500_v48, 1 }
 0x19a   :  { %v502_v53 = vadd.f32 %v501_v52, %v500_v48  ;;  %v503_v54 = vmul.f32 0.125, %v495_v51 }
 0x19c   :  { %v504_v57 = vmul.f32 0.125, %v502_v53  ;;  %v505_v58 = vmul.f32 %v503_v54, %v503_v54 }
 0x19e   :  { %v506_v59 = vsub.f32 %v504_v57, %v505_v58 }
 0x1a0   :  { %v507_v62 = vmax.f32 %v506_v59, 0.0 }
 0x1a2   :  { %v508_v63 = vadd.f32 1e-05, %v507_v62 }
 0x1a4   :  { %1019 = vrsqrt.f32 %v508_v63  ;;  %vm515_vm4 = vweird.f32 %v508_v63 }
 0x1aa   :  { %v1020_v7 = vpop.eup %1019 }
 0x1ab   :  { %v510_v8 = vmul.f32 %v1020_v7, %v508_v63  ;;  %vm516_vm3 = vweird.f32 %v1020_v7 }
 0x1ac   :  { %vm517_vm5 = vmor %vm515_vm4, %vm516_vm3 }
 0x1ad   :  { %v511_v10 = vmul.f32 %v1020_v7, %v510_v8 }
 0x1af   :  { %v512_v11 = vmul.f32 0.5, %v511_v10 }
 0x1b1   :  { %v513_v15 = vsub.f32 1.5, %v512_v11 }
 0x1b3   :  { %v514_v16 = vmul.f32 %v1020_v7, %v513_v15 }
 0x1b5   :  { %v518_v18 = vsel %vm517_vm5, %v1020_v7, %v514_v16 }
 0x1b6   :  { %v519_v19 = vmul.f32 %v518_v18, %v1243_v6 }
 0x1b8   :  { %v520_v20 = vmul.f32 %v519_v19, %v503_v54  ;;  %v525_v22 = vperm.slane %v519_v19, 2 }
 0x1ba   :  { %v522_v21 = vrot.slane %v520_v20, 7  ;;  %v526_v24 = vmul.f32 %v525_v22, %v1250_v34 }
 0x1bc   :  { %v524_v23 = vsub.f32 %v1243_v6, %v522_v21 }
 0x1be   :  { %v527_v25 = vperm.slane %v524_v23, 3 }
 0x1c0   :  { %v528_v26 = vadd.f32 %v527_v25, %v526_v24 }
 0x1c2   :  { %v529_v27 = vmax.f32 %v528_v26, 0.0 }
 0x1c4   :  { %v530_v28 = vpack.c.bf16 %v529_v27, %v529_v27 }
 0x1c6   :  { %531 = vst [vmem:[#allocation3] sm:$0x3] %v530_v28 }
 0x1c7   :  { %533 = vst.sshfl [vmem:[#allocation1] sm:$0xff pattern:$0x75643120] %v530_v28 }
 0x1cd   :  { %v539_v29 = vld [vmem:[#allocation3] sm:$0x3] }
 0x1ce   :  { %691 = vmatmul.bf16.vlgmr.msrb.gmra.mxu1 %v539_v29  ;;  %v535_v30 = vld [vmem:[#allocation1 + $0x1] ss:$2 sm:$0xff] }
 0x1cf   :  { %538 = vst [vmem:[#allocation3 + $0x2] sm:$0x3] %v535_v30 }
 0x1d6   :  { %v556_v12 = vld [vmem:[#allocation3 + $0x2] sm:$0x3] }
 0x1d7   :  { %630 = vmatmul.bf16.vlgmr.msrb.gmra.mxu0 %v556_v12 }
 0x24b   :  { %v692_v13 = vpop.f32.mrf.mxu1 }
 0x253   :  { %v694_v31 = vpop.f32.mrf.mxu1 }
 0x254   :  { %v631_v17 = vpop.f32.mrf.mxu0 }
 0x255   :  { %v693_v32 = vadd.f32 %v692_v13, %v631_v17 }
 0x257   :  { %v697_v33 = vsel %vm696_vm6, %v693_v32, 0.0  ;;  %v704_v35 = vmul.f32 %v693_v32, %v693_v32 }
 0x258   :  { %v698_v34 = vrot.slane %v697_v33, 4 }
 0x259   :  { %v705_v36 = vsel %vm696_vm6, %v704_v35, 0.0 }
 0x25a   :  { %v699_v37 = vadd.f32 %v698_v34, %v697_v33  ;;  %v706_v38 = vrot.slane %v705_v36, 4 }
 0x25c   :  { %v700_v39 = vrot.slane %v699_v37, 2  ;;  %v707_v40 = vadd.f32 %v706_v38, %v705_v36  ;;  %v633_v41 = vpop.f32.mrf.mxu0 }
 0x25e   :  { %v701_v42 = vadd.f32 %v700_v39, %v699_v37  ;;  %v708_v43 = vrot.slane %v707_v40, 2 }
 0x260   :  { %v702_v44 = vrot.slane %v701_v42, 1  ;;  %v709_v45 = vadd.f32 %v708_v43, %v707_v40 }
 0x262   :  { %v703_v46 = vadd.f32 %v702_v44, %v701_v42  ;;  %v710_v47 = vrot.slane %v709_v45, 1 }
 0x264   :  { %v711_v48 = vadd.f32 %v710_v47, %v709_v45  ;;  %v712_v49 = vmul.f32 0.25, %v703_v46 }
 0x266   :  { %v713_v50 = vmul.f32 0.25, %v711_v48  ;;  %v714_v51 = vmul.f32 %v712_v49, %v712_v49 }
 0x268   :  { %v715_v52 = vsub.f32 %v713_v50, %v714_v51 }
 0x26a   :  { %v716_v53 = vmax.f32 %v715_v52, 0.0 }
 0x26c   :  { %v717_v54 = vadd.f32 1e-05, %v716_v53 }
 0x26e   :  { %1021 = vrsqrt.f32 %v717_v54  ;;  %vm724_vm8 = vweird.f32 %v717_v54 }
 0x274   :  { %v1022_v55 = vpop.eup %1021 }
 0x275   :  { %v719_v56 = vmul.f32 %v1022_v55, %v717_v54  ;;  %vm725_vm7 = vweird.f32 %v1022_v55 }
 0x276   :  { %vm726_vm9 = vmor %vm724_vm8, %vm725_vm7 }
 0x277   :  { %v720_v57 = vmul.f32 %v1022_v55, %v719_v56 }
 0x279   :  { %v721_v58 = vmul.f32 0.5, %v720_v57 }
 0x27b   :  { %v722_v59 = vsub.f32 1.5, %v721_v58 }
 0x27d   :  { %v723_v60 = vmul.f32 %v1022_v55, %v722_v59 }
 0x27f   :  { %v727_v61 = vsel %vm726_vm9, %v1022_v55, %v723_v60 }
 0x280   :  { %v728_v62 = vmul.f32 %v727_v61, %v1243_v6 }
 0x282   :  { %v729_v63 = vmul.f32 %v728_v62, %v712_v49  ;;  %v734_v0 = vperm.slane %v728_v62, 4 }
 0x284   :  { %v731_v1 = vrot.slane %v729_v63, 7  ;;  %v735_v3 = vmul.f32 %v734_v0, %v693_v32 }
 0x286   :  { %v733_v2 = vsub.f32 %v1243_v6, %v731_v1 }
 0x288   :  { %v736_v4 = vperm.slane %v733_v2, 5 }
 0x28a   :  { %v737_v5 = vadd.f32 %v736_v4, %v735_v3 }
 0x28c   :  { %v738_v7 = vmax.f32 %v737_v5, 0.0 }
 0x28e   :  { %739 = vst [vmem:[#allocation13] sm:$0xf] %v738_v7 }
 0x28f   :  { %750 = dma.vmem_to_hbm [thread:$0]  %s746_s4, 64, %s748_s19, [#allocation6]  }
 0x290   :  { %1173 = dma.done.wait [#allocation6], 64  }
 0x291   :  { %1174 = vsyncadd [#allocation6], 4294967232 }
 0x292   :  { %755 = vsyncpa [#allocation5], 1 }
 0x293   :  { %756 = vsyncpa [#allocation8], 1 }
 0x294   :  { %757 = vsyncpa [#allocation11], 1 }
 0x295   :  { %758 = vsyncpa [#allocation6], 1 }

</bundles_post_ra>
